<compile_context>
chip_gen: v6e
topology: v6e:2x2x1
jax: 0.10.0
libtpu: 0.0.40
codegen_flags: <defaults>
</compile_context>

<pallas_src>
import functools

import jax
import jax.numpy as jnp
from jax.experimental import pallas as pl
from jax.experimental.pallas import tpu as pltpu

_LANE = 128
_SUBLANE = 8


def _round_up(x, m):
    return ((x + m - 1) // m) * m


def _choose_row_tile(n, d_in, d_t_pad):
    # ~2 MiB per streamed f32 x block (amortizes per-step overhead), capped so
    # the (tn, d_t_pad) f32 activation stays <= ~4 MiB of VMEM.
    tn = (2 * 1024 * 1024) // (d_in * 4)
    tn = min(tn, (4 * 1024 * 1024) // (d_t_pad * 4))
    tn = max(tn, _SUBLANE)
    tn = min(tn, _round_up(n, _SUBLANE))
    return _round_up(tn, _SUBLANE)


def _task_encoder_kernel(x_ref, w1_ref, b1_ref, o_ref, *,
                         n_valid, row_tile, tiles_per_core, mask_last):
    # x_ref : (tn, d_in)       f32, streamed per grid step
    # w1_ref: (d_in, d_t_pad)  f32, VMEM-resident (constant index_map)
    # b1_ref: (1, d_t_pad)     f32, VMEM-resident
    # o_ref : (1, 1, d_t_pad)  f32, per-core partial row-sum (resident over t)
    c = pl.program_id(0)
    t = pl.program_id(1)
    g = c * tiles_per_core + t          # global row-tile index (may be clamped in DMA)

    @pl.when(t == 0)
    def _init():
        o_ref[...] = jnp.zeros_like(o_ref)

    # Encoder matmul on the MXU (f32 accumulate) + bias + ReLU.
    h = jnp.dot(x_ref[...], w1_ref[...], preferred_element_type=jnp.float32)
    h = jnp.maximum(h + b1_ref[...], 0.0)

    # Row-sum on the MXU (ones @ h) — keeps the cross-sublane reduce off the
    # XLU/VPU; the MXU has large slack in this memory-bound kernel.
    ones = jnp.ones((1, row_tile), jnp.float32)

    def _accum(hh):
        o_ref[...] += jnp.dot(ones, hh, preferred_element_type=jnp.float32)[None]

    if not mask_last:                   # statically known: every tile fully in-bounds
        _accum(h)
    else:
        fully_valid = (g + 1) * row_tile <= n_valid

        @pl.when(fully_valid)
        def _plain():
            _accum(h)

        @pl.when(jnp.logical_not(fully_valid))
        def _ragged():
            # Select (NOT a multiply) so NaN/Inf garbage in the unspecified
            # rows of a partial / duplicated block cannot pollute the sum.
            row = g * row_tile + jax.lax.broadcasted_iota(
                jnp.int32, (row_tile, 1), 0)
            _accum(jnp.where(row < n_valid, h, 0.0))


def task_mean_mem_encoder_ssl_forward(x, w_enc, b_enc, w_pred, b_pred):
    """Forward pass of TaskMeanMemEncoderSSL.

    x:      (N, feat_num*emb_size) f32
    w_enc:  (feat_num*emb_size, task_dim) f32   (already [in, out])
    b_enc:  (task_dim,) f32
    w_pred: (task_dim, task_dim) f32            (already [in, out])
    b_pred: (task_dim,) f32
    Returns (task_dim,) f32.
    """
    n, d_in = x.shape
    d_task = w_enc.shape[1]
    d_t_pad = _round_up(d_task, _LANE)

    tn = _choose_row_tile(n, d_in, d_t_pad)
    num_tiles = pl.cdiv(n, tn)
    num_cores = 1 if num_tiles == 1 else 2          # leading "parallel" axis (v7x: 2 TCs)
    tiles_per_core = pl.cdiv(num_tiles, num_cores)
    # Does any (core, tile) step need the ragged-row select?
    mask_last = (num_tiles * tn != n) or (tiles_per_core * num_cores != num_tiles)

    # Tiny, read-once weights: lane-pad d_task -> d_t_pad (zero cols contribute 0).
    w1_p = jnp.zeros((d_in, d_t_pad), jnp.float32).at[:, :d_task].set(
        w_enc.astype(jnp.float32))
    b1_p = jnp.zeros((1, d_t_pad), jnp.float32).at[0, :d_task].set(
        b_enc.astype(jnp.float32))

    kernel = functools.partial(
        _task_encoder_kernel, n_valid=n, row_tile=tn,
        tiles_per_core=tiles_per_core, mask_last=mask_last)

    # Clamp so duplicated tiles (odd tile counts split over 2 cores) stay in
    # bounds; their rows are >= n so the in-kernel select zeroes them out.
    x_map = lambda c, t: (jnp.minimum(c * tiles_per_core + t, num_tiles - 1), 0)

    parts = pl.pallas_call(
        kernel,
        out_shape=jax.ShapeDtypeStruct((num_cores, 1, d_t_pad), jnp.float32),
        grid=(num_cores, tiles_per_core),
        in_specs=[
            pl.BlockSpec((tn, d_in), x_map),                       # x: streamed
            pl.BlockSpec((d_in, d_t_pad), lambda c, t: (0, 0)),    # W_enc: resident
            pl.BlockSpec((1, d_t_pad), lambda c, t: (0, 0)),       # b_enc: resident
        ],
        out_specs=pl.BlockSpec((1, 1, d_t_pad), lambda c, t: (c, 0, 0)),
        compiler_params=pltpu.CompilerParams(
            dimension_semantics=("parallel", "arbitrary"),
            vmem_limit_bytes=32 * 1024 * 1024,
        ),
    )(x, w1_p, b1_p)

    # Mean + predictor (tiny (1,d)x(d,d) matmul) stay in XLA per perf review.
    task_emb = parts.sum(axis=(0, 1))[:d_task] / n
    return task_emb @ w_pred + b_pred


def _linear_init(key, in_dim, out_dim):
    # matches torch.nn.Linear default init: U(-1/sqrt(in), 1/sqrt(in))
    kw, kb = jax.random.split(key)
    bound = 1.0 / (in_dim ** 0.5)
    w = jax.random.uniform(kw, (out_dim, in_dim), jnp.float32, -bound, bound)
    b = jax.random.uniform(kb, (out_dim,), jnp.float32, -bound, bound)
    return w, b


if __name__ == "__main__":
    feat_num = 4
    emb_size = 8
    task_dim = 32
    d_in = feat_num * emb_size          # 32

    key = jax.random.PRNGKey(0)
    k_x, k_enc, k_pred, k_x2 = jax.random.split(key, 4)

    # encoder_layer: Linear(d_in, task_dim); predictor: Linear(task_dim, task_dim)
    w_enc_oi, b_enc = _linear_init(k_enc, d_in, task_dim)      # torch [out, in]
    w_pred_oi, b_pred = _linear_init(k_pred, task_dim, task_dim)
    w_enc = jnp.transpose(w_enc_oi)                            # -> [in, out]
    w_pred = jnp.transpose(w_pred_oi)

    def reference(x):
        h = jnp.maximum(x @ w_enc + b_enc, 0.0)
        return h.mean(axis=0) @ w_pred + b_pred

    # Small case: N not a multiple of the tile -> exercises the ragged-row select.
    n_small = 10
    x_small = jax.random.normal(k_x, (n_small, d_in), jnp.float32)
    y_small = jnp.zeros((n_small,), jnp.int32)   # y is unused by forward() math

    out = jax.block_until_ready(
        task_mean_mem_encoder_ssl_forward(x_small, w_enc, b_enc, w_pred, b_pred))
    ref = reference(x_small)
    assert out.shape == (task_dim,)
    assert jnp.allclose(out, ref, atol=2e-3, rtol=2e-3), (
        float(jnp.max(jnp.abs(out - ref))))

    # Larger case: multiple row tiles -> exercises the two-core split, the
    # clamped duplicate tile, and the unmasked interior fast path.
    n_big = 20000
    x_big = jax.random.normal(k_x2, (n_big, d_in), jnp.float32)
    out_big = jax.block_until_ready(
        task_mean_mem_encoder_ssl_forward(x_big, w_enc, b_enc, w_pred, b_pred))
    ref_big = reference(x_big)
    assert jnp.allclose(out_big, ref_big, atol=2e-3, rtol=2e-3), (
        float(jnp.max(jnp.abs(out_big - ref_big))))

    print("KERNEL_OK")
</pallas_src>

<mosaic_0001>
module attributes {stable_mosaic.version = 11 : i64} {
  func.func @_task_encoder_kernel(%arg0: i32, %arg1: i32, %arg2: memref<16x32xf32, #tpu.memory_space<vmem>>, %arg3: memref<32x128xf32, #tpu.memory_space<vmem>>, %arg4: memref<1x128xf32, #tpu.memory_space<vmem>>, %arg5: memref<1x1x128xf32, #tpu.memory_space<vmem>>) attributes {dimension_semantics = [#tpu.dimension_semantics<parallel>, #tpu.dimension_semantics<arbitrary>], iteration_bounds = array<i64: 1, 1>, scalar_prefetch = 0 : i64, scratch_operands = 0 : i64, tpu.core_type = #tpu.core_type<tc>, window_params = [{transform_indices = @transform_0, window_bounds = array<i64: 16, 32>}, {pipeline_mode = #tpu.pipeline_mode<synchronous>, transform_indices = @transform_1, window_bounds = array<i64: 32, 128>}, {pipeline_mode = #tpu.pipeline_mode<synchronous>, transform_indices = @transform_2, window_bounds = array<i64: 1, 128>}, {transform_indices = @transform_3, window_bounds = array<i64: 1, 1, 128>}]} {
    %c1_i32 = arith.constant 1 : i32
    %0 = arith.muli %arg0, %c1_i32 : i32
    %1 = arith.addi %0, %arg1 : i32
    %c0_i32 = arith.constant 0 : i32
    %2 = arith.cmpi eq, %arg1, %c0_i32 : i32
    %3 = arith.extui %2 : i1 to i32
    %c0_i32_0 = arith.constant 0 : i32
    %4 = arith.cmpi ne, %3, %c0_i32_0 : i32
    scf.if %4 {
      %cst_11 = arith.constant 0.000000e+00 : f32
      %22 = vector.broadcast %cst_11 : f32 to vector<1x1x128xf32>
      %c0_12 = arith.constant 0 : index
      %c0_13 = arith.constant 0 : index
      %c0_14 = arith.constant 0 : index
      %23 = vector.load %arg5[%c0_12, %c0_13, %c0_14] : memref<1x1x128xf32, #tpu.memory_space<vmem>>, vector<1x1x128xf32>
      tpu.vector_store %arg5[%c0_12, %c0_13, %c0_14], %22 {strides = array<i32>} : memref<1x1x128xf32, #tpu.memory_space<vmem>>, vector<1x1x128xf32>,
    } else {
    }
    %c0 = arith.constant 0 : index
    %c0_1 = arith.constant 0 : index
    %5 = vector.load %arg2[%c0, %c0_1] : memref<16x32xf32, #tpu.memory_space<vmem>>, vector<16x32xf32>
    %c0_2 = arith.constant 0 : index
    %c0_3 = arith.constant 0 : index
    %6 = vector.load %arg3[%c0_2, %c0_3] : memref<32x128xf32, #tpu.memory_space<vmem>>, vector<32x128xf32>
    %cst = arith.constant dense<0.000000e+00> : vector<16x128xf32>
    %7 = tpu.matmul %5, %6, %cst {dimension_numbers = #tpu.dot_dimension_numbers<[1], [0], [0], [1], [0, 0, 1, 1], [], []>} : vector<16x32xf32>, vector<32x128xf32>, vector<16x128xf32> -> vector<16x128xf32>
    %c0_4 = arith.constant 0 : index
    %c0_5 = arith.constant 0 : index
    %8 = vector.load %arg4[%c0_4, %c0_5] : memref<1x128xf32, #tpu.memory_space<vmem>>, vector<1x128xf32>
    %9 = vector.broadcast %8 : vector<1x128xf32> to vector<16x128xf32>
    %10 = arith.addf %7, %9 : vector<16x128xf32>
    %cst_6 = arith.constant 0.000000e+00 : f32
    %11 = vector.broadcast %cst_6 : f32 to vector<16x128xf32>
    %12 = arith.maximumf %10, %11 : vector<16x128xf32>
    %cst_7 = arith.constant 1.000000e+00 : f32
    %13 = vector.broadcast %cst_7 : f32 to vector<1x16xf32>
    %c1_i32_8 = arith.constant 1 : i32
    %14 = arith.addi %1, %c1_i32_8 : i32
    %c16_i32 = arith.constant 16 : i32
    %15 = arith.muli %14, %c16_i32 : i32
    %c10_i32 = arith.constant 10 : i32
    %16 = arith.cmpi sle, %15, %c10_i32 : i32
    %17 = arith.extui %16 : i1 to i32
    %c0_i32_9 = arith.constant 0 : i32
    %18 = arith.cmpi ne, %17, %c0_i32_9 : i32
    scf.if %18 {
      %c0_11 = arith.constant 0 : index
      %c0_12 = arith.constant 0 : index
      %c0_13 = arith.constant 0 : index
      %22 = vector.load %arg5[%c0_11, %c0_12, %c0_13] : memref<1x1x128xf32, #tpu.memory_space<vmem>>, vector<1x1x128xf32>
      %cst_14 = arith.constant dense<0.000000e+00> : vector<1x128xf32>
      %23 = tpu.matmul %13, %12, %cst_14 {dimension_numbers = #tpu.dot_dimension_numbers<[1], [0], [0], [1], [0, 0, 1, 1], [], []>} : vector<1x16xf32>, vector<16x128xf32>, vector<1x128xf32> -> vector<1x128xf32>
      %24 = vector.shape_cast %23 : vector<1x128xf32> to vector<1x1x128xf32>
      %25 = arith.addf %22, %24 : vector<1x1x128xf32>
      %c0_15 = arith.constant 0 : index
      %c0_16 = arith.constant 0 : index
      %c0_17 = arith.constant 0 : index
      %26 = vector.load %arg5[%c0_15, %c0_16, %c0_17] : memref<1x1x128xf32, #tpu.memory_space<vmem>>, vector<1x1x128xf32>
      tpu.vector_store %arg5[%c0_15, %c0_16, %c0_17], %25 {strides = array<i32>} : memref<1x1x128xf32, #tpu.memory_space<vmem>>, vector<1x1x128xf32>,
    } else {
    }
    %true = arith.constant true
    %19 = arith.xori %16, %true : i1
    %20 = arith.extui %19 : i1 to i32
    %c0_i32_10 = arith.constant 0 : i32
    %21 = arith.cmpi ne, %20, %c0_i32_10 : i32
    scf.if %21 {
      %c16_i32_11 = arith.constant 16 : i32
      %22 = arith.muli %1, %c16_i32_11 : i32
      %23 = tpu.iota {dimensions = array<i32: 0>} : vector<16x1xi32>
      %24 = vector.broadcast %22 : i32 to vector<16x1xi32>
      %25 = arith.addi %24, %23 : vector<16x1xi32>
      %c10_i32_12 = arith.constant 10 : i32
      %26 = vector.broadcast %c10_i32_12 : i32 to vector<16x1xi32>
      %27 = arith.cmpi slt, %25, %26 : vector<16x1xi32>
      %cst_13 = arith.constant 0.000000e+00 : f32
      %28 = vector.shape_cast %27 : vector<16x1xi1> to vector<16x1xi1>
      %29 = vector.broadcast %28 : vector<16x1xi1> to vector<16x128xi1>
      %30 = vector.broadcast %cst_13 : f32 to vector<16x128xf32>
      %31 = arith.select %29, %12, %30 : vector<16x128xi1>, vector<16x128xf32>
      %c0_14 = arith.constant 0 : index
      %c0_15 = arith.constant 0 : index
      %c0_16 = arith.constant 0 : index
      %32 = vector.load %arg5[%c0_14, %c0_15, %c0_16] : memref<1x1x128xf32, #tpu.memory_space<vmem>>, vector<1x1x128xf32>
      %cst_17 = arith.constant dense<0.000000e+00> : vector<1x128xf32>
      %33 = tpu.matmul %13, %31, %cst_17 {dimension_numbers = #tpu.dot_dimension_numbers<[1], [0], [0], [1], [0, 0, 1, 1], [], []>} : vector<1x16xf32>, vector<16x128xf32>, vector<1x128xf32> -> vector<1x128xf32>
      %34 = vector.shape_cast %33 : vector<1x128xf32> to vector<1x1x128xf32>
      %35 = arith.addf %32, %34 : vector<1x1x128xf32>
      %c0_18 = arith.constant 0 : index
      %c0_19 = arith.constant 0 : index
      %c0_20 = arith.constant 0 : index
      %36 = vector.load %arg5[%c0_18, %c0_19, %c0_20] : memref<1x1x128xf32, #tpu.memory_space<vmem>>, vector<1x1x128xf32>
      tpu.vector_store %arg5[%c0_18, %c0_19, %c0_20], %35 {strides = array<i32>} : memref<1x1x128xf32, #tpu.memory_space<vmem>>, vector<1x1x128xf32>,
    } else {
    }
    return
  }
  func.func @transform_0(%arg0: i32, %arg1: i32) -> (i32, i32) {
    %c1_i32 = arith.constant 1 : i32
    %0 = arith.muli %arg0, %c1_i32 : i32
    %1 = arith.addi %0, %arg1 : i32
    %c0_i32 = arith.constant 0 : i32
    %2 = arith.minsi %1, %c0_i32 : i32
    %c0_i32_0 = arith.constant 0 : i32
    %c0_i32_1 = arith.constant 0 : i32
    return %2, %c0_i32_0 : i32, i32
  }
  func.func @transform_1(%arg0: i32, %arg1: i32) -> (i32, i32) {
    %c0_i32 = arith.constant 0 : i32
    %c0_i32_0 = arith.constant 0 : i32
    %c0_i32_1 = arith.constant 0 : i32
    return %c0_i32, %c0_i32_0 : i32, i32
  }
  func.func @transform_2(%arg0: i32, %arg1: i32) -> (i32, i32) {
    %c0_i32 = arith.constant 0 : i32
    %c0_i32_0 = arith.constant 0 : i32
    %c0_i32_1 = arith.constant 0 : i32
    return %c0_i32, %c0_i32_0 : i32, i32
  }
  func.func @transform_3(%arg0: i32, %arg1: i32) -> (i32, i32, i32) {
    %c0_i32 = arith.constant 0 : i32
    %c0_i32_0 = arith.constant 0 : i32
    %c0_i32_1 = arith.constant 0 : i32
    return %arg0, %c0_i32, %c0_i32_0 : i32, i32, i32
  }
}

</mosaic_0001>

<bundles_post_ra>
// kernel: tpu_custom_call.1
= control target key start
LH: loop header
LB: loop body
LE: loop exit
PB: predicated region body
PF: predicated region fallthrough
CT: control target
= control target key end

     0   :  { %8 = vsyncpa [#allocation3], 0  ;;  %s502_s0 = inlined_call_operand.hbm [shape: f32[10,32], index: 0, kind: input, shape index: {}]   ;;  %s503_s1 = inlined_call_operand.hbm [shape: f32[32,128], index: 1, kind: input, shape index: {}]   ;;  %s504_s2 = inlined_call_operand.vmem [shape: f32[1,128], index: 2, kind: input, shape index: {}]   ;;  %s505_s3 = inlined_call_operand.hbm [shape: f32[1,1,128], index: 3, kind: output, shape index: {}]  }
   0x1   :  { %9 = vsyncpa [#allocation6], 0 }
   0x2   :  { %10 = vsyncpa [#allocation4], 0  ;;  %s460_s12 = smov [#allocation2]  }
   0x3   :  { %s22_s13 = sshll.u32 %s460_s12, 4  ;;  %s23_s13 = int_to_ptr.vmem [resolvable:$true] %s22_s13 }
   0x4   :  { %s402_s14 = scalar_lea.vmem %s23_s13, 256  ;;  %p407_p1 = scmp.lt.s32.totalorder %s23_s13, %s23_s13 }
   0x5   :  { %p403_p0 = scmp.ne.s32.totalorder %s23_s13, %s402_s14  ;;  %p408_p2 = scmp.lt.s32.totalorder %s402_s14, %s402_s14 }
   0x7   :  { %p409_p3 = por %p408_p2, %p407_p1 }
   0x9   :  { %p410_p4 = pnand %p409_p3, %p403_p0 }
   0xb   :  { %413 = shalt.err (!%p410_p4)
}
   0xc   :  { %s461_s15 = smov 128   ;;  %s462_s16 = smov 8  }
   0xd   :  { %28 = dma.hbm_to_vmem [thread:$0]  %s502_s0, 256, %s23_s13, [#allocation3], %s461_s15, %s461_s15, %s462_s16  }
   0xe   :  { %s463_s19 = smov [#allocation5]  }
   0xf   :  { %s34_s20 = sshll.u32 %s463_s19, 4  ;;  %s35_s20 = int_to_ptr.vmem [resolvable:$true] %s34_s20 }
  0x10   :  { %s422_s21 = scalar_lea.vmem %s35_s20, 512  ;;  %p427_p6 = scmp.lt.s32.totalorder %s35_s20, %s35_s20 }
  0x11   :  { %p423_p5 = scmp.ne.s32.totalorder %s35_s20, %s422_s21  ;;  %p428_p7 = scmp.lt.s32.totalorder %s422_s21, %s422_s21 }
  0x13   :  { %p429_p8 = por %p428_p7, %p427_p6 }
  0x15   :  { %p430_p9 = pnand %p429_p8, %p423_p5 }
  0x17   :  { %433 = shalt.err (!%p430_p9)
}
  0x18   :  { %40 = dma.hbm_to_vmem [thread:$0]  %s503_s1, 512, %s35_s20, [#allocation6], %s461_s15, %s461_s15, %s462_s16  }
  0x19   :  { %454 = dma.done.wait [#allocation3], 256  }
  0x1a   :  { %455 = vsyncadd [#allocation3], 4294967040 }
  0x1b   :  { %456 = dma.done.wait [#allocation6], 512  }
  0x1c   :  { %457 = vsyncadd [#allocation6], 4294966784  ;;  %vm72_vm0 = vcmask 261120   ;;  %v64_v0 = vld [vmem:[#allocation5 + $0x18] sm:$0xff]  ;;  %v63_v1 = vld [vmem:[#allocation5 + $0x10] sm:$0xff]  ;;  %v464_v6 = vmov 0.0   ;;  %v244_v7 = vlaneseq }
  0x1d   :  { %368 = vmatprep.subr.mxu0 %v64_v0  ;;  %v59_v2 = vld [vmem:[#allocation2] sm:$0xff]  ;;  %v62_v3 = vld [vmem:[#allocation5 + $0x8] sm:$0xff]  ;;  %v61_v4 = vld [vmem:[#allocation5] sm:$0xff]  ;;  %58 = vst [vmem:[#allocation7] sm:$0x1] %v464_v6  ;;  %379 = vmatprep.subr.mxu1 %v464_v6  ;;  %vm465_vm1 = vmmov 0  }
  0x1e   :  { %369 = vmatpush3.msra.mxu0 %v64_v0  ;;  %376 = vmatprep.mubr.msk.f32.mxu0 %vm72_vm0, %v59_v2  ;;  %v60_v5 = vld [vmem:[#allocation2 + $0x8] sm:$0xff]  ;;  %v245_v8 = vshrl.u32 %v244_v7, 7  ;;  %v353_v9 = vld [vmem:[%s504_s2] ss:$0 sm:$0xff]  ;;  %vm259_vm3 = vcmask 130048   ;;  %v466_v17 = vmov 1.0  }
  0x1f   :  { %370 = vmatprep.subr.mxu0 %v63_v1  ;;  %383 = vmatprep.mubr.msk.f32.mxu1 %vm465_vm1, %v464_v6  ;;  %s467_s24 = smov [#allocation7]  }
  0x20   :  { %371 = vmatpush3.msra.mxu0 %v63_v1  ;;  %v246_v10 = vadd.s32 8, %v245_v8  ;;  %s341_s25 = sshll.u32 %s467_s24, 4  ;;  %s342_s25 = int_to_ptr.vmem [resolvable:$true] %s341_s25 }
  0x21   :  { %372 = vmatprep.subr.mxu0 %v62_v3  ;;  %s434_s2 = scalar_lea.vmem %s342_s25, 16  ;;  %s438_s26 = scalar_lea.vmem %s342_s25, 32 }
  0x22   :  { %373 = vmatpush3.msra.mxu0 %v62_v3  ;;  %vm251_vm2 = vcmp.lt.s32.totalorder %v246_v10, 10  ;;  %p435_p10 = scmp.ne.s32.totalorder %s342_s25, %s434_s2  ;;  %p439_p11 = scmp.lt.s32.totalorder %s342_s25, %s342_s25 }
  0x23   :  { %374 = vmatprep.subr.mxu0 %v61_v4  ;;  %p440_p12 = scmp.lt.s32.totalorder %s438_s26, %s434_s2 }
  0x24   :  { %375 = vmatpush3.msra.mxu0 %v61_v4  ;;  %v258_v18 = vld [vmem:[#allocation7] sm:$0x1] }
  0x25   :  { %377 = vmatmul.mubr.msk.f32.vlgmr.msra.gmra.mxu0 %vm72_vm0, %v60_v5  ;;  %p441_p13 = por %p440_p12, %p439_p11 }
  0x27   :  { %p442_p0 = pnand %p441_p13, %p435_p10 }
  0xe5   :  { %v378_v11 = vpop.f32.mrf.mxu0 }
  0xe6   :  { %v151_v12 = vadd.f32 %v378_v11, %v353_v9 }
  0xe7   :  { %v145_v13 = vpop.f32.mrf.mxu0 }
  0xe8   :  { %v155_v14 = vmax.f32 %v151_v12, 0.0  ;;  %v146_v15 = vadd.f32 %v353_v9, %v145_v13 }
  0xea   :  { %v154_v16 = vmax.f32 %v146_v15, 0.0  ;;  %380 = vmatpush3.msk.msra.mxu1 %vm251_vm2, %v155_v14 }
  0xeb   :  { %381 = vmatprep.subr.mxu1 %v464_v6 }
  0xec   :  { %382 = vmatpush3.msra.mxu1 %v154_v16 }
  0xed   :  { %384 = vmatmul.mubr.msk.f32.vlgmr.msra.gmra.mxu1 %vm259_vm3, %v466_v17 }
 0x1ad   :  { %v329_v19 = vpop.f32.mrf.mxu1 }
 0x1ae   :  { %v333_v20 = vadd.f32 %v329_v19, %v258_v18 }
 0x1af   :  { %v385_v21 = vpop.f32.mrf.mxu1 }
 0x1b0   :  { %334 = vst [vmem:[#allocation7] sm:$0x1] %v333_v20 }
 0x1b1   :  { %445 = shalt.err (!%p442_p0)
}
 0x1b2   :  { %344 = dma.vmem_to_hbm [thread:$0]  %s342_s25, 16, %s505_s3, [#allocation4]  }
 0x1b3   :  { %458 = dma.done.wait [#allocation4], 16  }
 0x1b4   :  { %459 = vsyncadd [#allocation4], 4294967280 }
 0x1b5   :  { %348 = vsyncpa [#allocation3], 1 }
 0x1b6   :  { %349 = vsyncpa [#allocation6], 1 }
 0x1b7   :  { %350 = vsyncpa [#allocation4], 1 }

</bundles_post_ra>
